<compile_context>
chip_gen: v6e
topology: v6e:2x2x1
jax: 0.10.0
libtpu: 0.0.40
codegen_flags: <defaults>
</compile_context>

<pallas_src>
import functools

import numpy as np
import jax
import jax.numpy as jnp
from jax import lax
from jax.experimental import pallas as pl
from jax.experimental.pallas import tpu as pltpu


def mlp_base_fused_kernel(x_ref, w1_ref, w2_ref, bias_ref, out_ref, *, hidden_size):
    H = hidden_size

    x = x_ref[...]                       # [T, D]
    biases = bias_ref[...]               # [8, 2H] packed operand (one vreg)
    b1 = biases[0:1, :]                  # fused layer-1 bias   [1, 2H]
    b2 = biases[1:2, :]                  # fused layer-2 bias   [1, 2H]
    clw = biases[2:3, :]                 # critic_linear row, zero on actor half
    clb = biases[3:4, 0:1]               # critic_linear scalar bias [1, 1]

    # Two fused MXU passes over the 128-lane (2H) slab.
    h1 = jnp.tanh(jnp.dot(x, w1_ref[...],
                          preferred_element_type=jnp.float32) + b1)     # [T, 2H]
    h2 = jnp.tanh(jnp.dot(h1, w2_ref[...],
                          preferred_element_type=jnp.float32) + b2)     # [T, 2H]

    # critic_linear as VPU multiply + XLU cross-lane reduce (no 1-wide MXU op).
    value = jnp.sum(h2 * clw, axis=-1, keepdims=True) + clb             # [T, 1]

    # Lane-dense output slab: cols [0:H] = actor hidden, cols [H:2H] = value.
    cols = lax.broadcasted_iota(jnp.int32, h2.shape, dimension=1)
    out_ref[...] = jnp.where(cols < H, h2, value).astype(out_ref.dtype)


def mlp_base_forward(x, fused_params):
    """Fused MLPBase hot path.

    x: [N, num_inputs] float32
    fused_params: dict from pack_params().
    Returns (value [N, 1], hidden_actor [N, H]).
    """
    N, D = x.shape
    H2 = fused_params["w1"].shape[1]     # 2 * hidden_size (lane-dense, 128 for H=64)
    H = H2 // 2

    # Batch tiling: weights stay resident, x / out slab are pipelined per tile.
    # TILE_N = 512 keeps (x + out) * 2 buffers + weights far under v7x's 64 MiB.
    TILE_N = N if N <= 512 else 512
    grid = (pl.cdiv(N, TILE_N),)

    out_slab = pl.pallas_call(
        functools.partial(mlp_base_fused_kernel, hidden_size=H),
        out_shape=jax.ShapeDtypeStruct((N, H2), jnp.float32),
        grid=grid,
        in_specs=[
            pl.BlockSpec((TILE_N, D), lambda i: (i, 0)),   # x: tiled over batch
            pl.BlockSpec((D, H2), lambda i: (0, 0)),       # fused W1 (resident)
            pl.BlockSpec((H2, H2), lambda i: (0, 0)),      # block-diag W2 (resident)
            pl.BlockSpec((8, H2), lambda i: (0, 0)),       # packed biases (resident)
        ],
        out_specs=pl.BlockSpec((TILE_N, H2), lambda i: (i, 0)),
        compiler_params=pltpu.CompilerParams(
            dimension_semantics=("parallel",)),
    )(x, fused_params["w1"], fused_params["w2"], fused_params["bias"])

    hidden_actor = out_slab[:, :H]
    value = out_slab[:, H:H + 1]
    return value, hidden_actor


def init_params(key, num_inputs, hidden_size):
    """Matches MLPBase.__init__: orthogonal weights (gain sqrt(2)), zero biases.
    Weights stored as [in, out] (transpose of PyTorch's [out, in])."""
    ortho = jax.nn.initializers.orthogonal(scale=float(np.sqrt(2.0)))
    ks = jax.random.split(key, 5)
    return {
        "actor_w1": ortho(ks[0], (num_inputs, hidden_size), jnp.float32),
        "actor_b1": jnp.zeros((1, hidden_size), jnp.float32),
        "actor_w2": ortho(ks[1], (hidden_size, hidden_size), jnp.float32),
        "actor_b2": jnp.zeros((1, hidden_size), jnp.float32),
        "critic_w1": ortho(ks[2], (num_inputs, hidden_size), jnp.float32),
        "critic_b1": jnp.zeros((1, hidden_size), jnp.float32),
        "critic_w2": ortho(ks[3], (hidden_size, hidden_size), jnp.float32),
        "critic_b2": jnp.zeros((1, hidden_size), jnp.float32),
        "critic_linear_w": ortho(ks[4], (hidden_size, 1), jnp.float32),
        "critic_linear_b": jnp.zeros((1, 1), jnp.float32),
    }


def pack_params(params):
    """One-time (setup path) packing of per-branch params into fused operands."""
    H = params["actor_w2"].shape[1]
    f32 = jnp.float32

    # Layer 1: concat actor / critic along the output dim -> [D, 2H].
    w1 = jnp.concatenate([params["actor_w1"], params["critic_w1"]], axis=1)

    # Layer 2: block-diagonal [[Wa2, 0], [0, Wc2]] -> [2H, 2H].
    z = jnp.zeros((H, H), f32)
    w2 = jnp.concatenate([
        jnp.concatenate([params["actor_w2"], z], axis=1),
        jnp.concatenate([z, params["critic_w2"]], axis=1),
    ], axis=0)

    # Packed bias slab [8, 2H]:
    #   row 0: fused b1, row 1: fused b2,
    #   row 2: critic_linear row (zeros over the actor half),
    #   row 3: critic_linear scalar bias broadcast, rows 4-7: zero padding.
    b1 = jnp.concatenate([params["actor_b1"], params["critic_b1"]], axis=1)
    b2 = jnp.concatenate([params["actor_b2"], params["critic_b2"]], axis=1)
    clw = jnp.concatenate([jnp.zeros((1, H), f32),
                           params["critic_linear_w"].reshape(1, H)], axis=1)
    clb = jnp.broadcast_to(params["critic_linear_b"].reshape(1, 1), (1, 2 * H))
    pad = jnp.zeros((4, 2 * H), f32)
    bias = jnp.concatenate([b1, b2, clw, clb, pad], axis=0)

    return {"w1": w1, "w2": w2, "bias": bias}


def mlp_base_reference(x, params):
    """Pure-JAX reference for correctness check."""
    ha = jnp.tanh(x @ params["actor_w1"] + params["actor_b1"])
    ha = jnp.tanh(ha @ params["actor_w2"] + params["actor_b2"])
    hc = jnp.tanh(x @ params["critic_w1"] + params["critic_b1"])
    hc = jnp.tanh(hc @ params["critic_w2"] + params["critic_b2"])
    value = hc @ params["critic_linear_w"] + params["critic_linear_b"]
    return value, ha


if __name__ == "__main__":
    key = jax.random.PRNGKey(0)
    k_x, k_h, k_p = jax.random.split(key, 3)

    batch = 8
    num_inputs = 32
    hidden_size = 64   # 2H = 128 -> exactly one lane-dense vreg width

    x = jax.random.normal(k_x, (batch, num_inputs), dtype=jnp.float32)
    # non-recurrent => recurrent_hidden_state_size == 1; hxs passed through untouched
    rnn_hxs = jax.random.normal(k_h, (batch, 1), dtype=jnp.float32)
    masks = jnp.ones((batch, 1), dtype=jnp.float32)

    params = init_params(k_p, num_inputs, hidden_size)
    fused = pack_params(params)

    value, hidden_actor = mlp_base_forward(x, fused)
    out_rnn_hxs = rnn_hxs  # pass-through (is_recurrent == False)

    jax.block_until_ready((value, hidden_actor, out_rnn_hxs))

    # correctness check vs pure-JAX reference
    value_ref, actor_ref = mlp_base_reference(x, params)
    np.testing.assert_allclose(np.asarray(value), np.asarray(value_ref),
                               rtol=1e-5, atol=1e-5)
    np.testing.assert_allclose(np.asarray(hidden_actor), np.asarray(actor_ref),
                               rtol=1e-5, atol=1e-5)

    assert value.shape == (batch, 1)
    assert hidden_actor.shape == (batch, hidden_size)
    assert out_rnn_hxs.shape == rnn_hxs.shape

    print("KERNEL_OK")
</pallas_src>

<mosaic_0001>
module attributes {stable_mosaic.version = 11 : i64} {
  func.func @mlp_base_fused_kernel(%arg0: i32, %arg1: memref<8x32xf32, #tpu.memory_space<vmem>>, %arg2: memref<32x128xf32, #tpu.memory_space<vmem>>, %arg3: memref<128x128xf32, #tpu.memory_space<vmem>>, %arg4: memref<8x128xf32, #tpu.memory_space<vmem>>, %arg5: memref<8x128xf32, #tpu.memory_space<vmem>>) attributes {dimension_semantics = [#tpu.dimension_semantics<parallel>], iteration_bounds = array<i64: 1>, scalar_prefetch = 0 : i64, scratch_operands = 0 : i64, tpu.core_type = #tpu.core_type<tc>, window_params = [{transform_indices = @transform_0, window_bounds = array<i64: 8, 32>}, {pipeline_mode = #tpu.pipeline_mode<synchronous>, transform_indices = @transform_1, window_bounds = array<i64: 32, 128>}, {pipeline_mode = #tpu.pipeline_mode<synchronous>, transform_indices = @transform_2, window_bounds = array<i64: 128, 128>}, {pipeline_mode = #tpu.pipeline_mode<synchronous>, transform_indices = @transform_3, window_bounds = array<i64: 8, 128>}, {transform_indices = @transform_4, window_bounds = array<i64: 8, 128>}]} {
    %c0 = arith.constant 0 : index
    %c0_0 = arith.constant 0 : index
    %0 = vector.load %arg1[%c0, %c0_0] : memref<8x32xf32, #tpu.memory_space<vmem>>, vector<8x32xf32>
    %c0_1 = arith.constant 0 : index
    %c0_2 = arith.constant 0 : index
    %1 = vector.load %arg4[%c0_1, %c0_2] : memref<8x128xf32, #tpu.memory_space<vmem>>, vector<8x128xf32>
    %2 = vector.extract_strided_slice %1 {offsets = [0, 0], sizes = [1, 128], strides = [1, 1]} : vector<8x128xf32> to vector<1x128xf32>
    %3 = vector.extract_strided_slice %1 {offsets = [1, 0], sizes = [1, 128], strides = [1, 1]} : vector<8x128xf32> to vector<1x128xf32>
    %4 = vector.extract_strided_slice %1 {offsets = [2, 0], sizes = [1, 128], strides = [1, 1]} : vector<8x128xf32> to vector<1x128xf32>
    %5 = vector.extract_strided_slice %1 {offsets = [3, 0], sizes = [1, 1], strides = [1, 1]} : vector<8x128xf32> to vector<1x1xf32>
    %c0_3 = arith.constant 0 : index
    %c0_4 = arith.constant 0 : index
    %6 = vector.load %arg2[%c0_3, %c0_4] : memref<32x128xf32, #tpu.memory_space<vmem>>, vector<32x128xf32>
    %cst = arith.constant dense<0.000000e+00> : vector<8x128xf32>
    %7 = tpu.matmul %0, %6, %cst {dimension_numbers = #tpu.dot_dimension_numbers<[1], [0], [0], [1], [0, 0, 1, 1], [], []>} : vector<8x32xf32>, vector<32x128xf32>, vector<8x128xf32> -> vector<8x128xf32>
    %8 = vector.broadcast %2 : vector<1x128xf32> to vector<8x128xf32>
    %9 = arith.addf %7, %8 : vector<8x128xf32>
    %10 = math.tanh %9 : vector<8x128xf32>
    %c0_5 = arith.constant 0 : index
    %c0_6 = arith.constant 0 : index
    %11 = vector.load %arg3[%c0_5, %c0_6] : memref<128x128xf32, #tpu.memory_space<vmem>>, vector<128x128xf32>
    %cst_7 = arith.constant dense<0.000000e+00> : vector<8x128xf32>
    %12 = tpu.matmul %10, %11, %cst_7 {dimension_numbers = #tpu.dot_dimension_numbers<[1], [0], [0], [1], [0, 0, 1, 1], [], []>} : vector<8x128xf32>, vector<128x128xf32>, vector<8x128xf32> -> vector<8x128xf32>
    %13 = vector.broadcast %3 : vector<1x128xf32> to vector<8x128xf32>
    %14 = arith.addf %12, %13 : vector<8x128xf32>
    %15 = math.tanh %14 : vector<8x128xf32>
    %16 = vector.broadcast %4 : vector<1x128xf32> to vector<8x128xf32>
    %17 = arith.mulf %15, %16 : vector<8x128xf32>
    %cst_8 = arith.constant dense<0.000000e+00> : vector<8xf32>
    %18 = vector.multi_reduction <add>, %17, %cst_8 [1] : vector<8x128xf32> to vector<8xf32>
    %19 = vector.shape_cast %18 : vector<8xf32> to vector<8x1xf32>
    %20 = vector.broadcast %5 : vector<1x1xf32> to vector<8x1xf32>
    %21 = arith.addf %19, %20 : vector<8x1xf32>
    %22 = tpu.iota {dimensions = array<i32: 1>} : vector<8x128xi32>
    %c64_i32 = arith.constant 64 : i32
    %23 = vector.broadcast %c64_i32 : i32 to vector<8x128xi32>
    %24 = arith.cmpi slt, %22, %23 : vector<8x128xi32>
    %25 = vector.shape_cast %21 : vector<8x1xf32> to vector<8x1xf32>
    %26 = vector.broadcast %25 : vector<8x1xf32> to vector<8x128xf32>
    %27 = arith.select %24, %15, %26 : vector<8x128xi1>, vector<8x128xf32>
    %c0_9 = arith.constant 0 : index
    %c0_10 = arith.constant 0 : index
    %28 = vector.load %arg5[%c0_9, %c0_10] : memref<8x128xf32, #tpu.memory_space<vmem>>, vector<8x128xf32>
    tpu.vector_store %arg5[%c0_9, %c0_10], %27 {strides = array<i32>} : memref<8x128xf32, #tpu.memory_space<vmem>>, vector<8x128xf32>,
    return
  }
  func.func @transform_0(%arg0: i32) -> (i32, i32) {
    %c0_i32 = arith.constant 0 : i32
    %c0_i32_0 = arith.constant 0 : i32
    return %arg0, %c0_i32 : i32, i32
  }
  func.func @transform_1(%arg0: i32) -> (i32, i32) {
    %c0_i32 = arith.constant 0 : i32
    %c0_i32_0 = arith.constant 0 : i32
    %c0_i32_1 = arith.constant 0 : i32
    return %c0_i32, %c0_i32_0 : i32, i32
  }
  func.func @transform_2(%arg0: i32) -> (i32, i32) {
    %c0_i32 = arith.constant 0 : i32
    %c0_i32_0 = arith.constant 0 : i32
    %c0_i32_1 = arith.constant 0 : i32
    return %c0_i32, %c0_i32_0 : i32, i32
  }
  func.func @transform_3(%arg0: i32) -> (i32, i32) {
    %c0_i32 = arith.constant 0 : i32
    %c0_i32_0 = arith.constant 0 : i32
    %c0_i32_1 = arith.constant 0 : i32
    return %c0_i32, %c0_i32_0 : i32, i32
  }
  func.func @transform_4(%arg0: i32) -> (i32, i32) {
    %c0_i32 = arith.constant 0 : i32
    %c0_i32_0 = arith.constant 0 : i32
    return %arg0, %c0_i32 : i32, i32
  }
}

</mosaic_0001>

<bundles_post_ra>
// kernel: tpu_custom_call.1
= control target key start
LH: loop header
LB: loop body
LE: loop exit
PB: predicated region body
PF: predicated region fallthrough
CT: control target
= control target key end

     0   :  { %9 = vsyncpa [#allocation3], 0  ;;  %s548_s0 = inlined_call_operand.hbm [shape: f32[8,32], index: 0, kind: input, shape index: {}]   ;;  %s549_s1 = inlined_call_operand.hbm [shape: f32[32,128], index: 1, kind: input, shape index: {}]   ;;  %s550_s2 = inlined_call_operand.hbm [shape: f32[128,128], index: 2, kind: input, shape index: {}]   ;;  %s551_s3 = inlined_call_operand.hbm [shape: f32[8,128], index: 3, kind: input, shape index: {}]   ;;  %s552_s4 = inlined_call_operand.hbm [shape: f32[8,128], index: 4, kind: output, shape index: {}]  }
   0x1   :  { %10 = vsyncpa [#allocation6], 0 }
   0x2   :  { %11 = vsyncpa [#allocation9], 0 }
   0x3   :  { %12 = vsyncpa [#allocation4], 0  ;;  %s476_s15 = smov [#allocation5]  }
   0x4   :  { %s28_s16 = sshll.u32 %s476_s15, 4  ;;  %s29_s16 = int_to_ptr.vmem [resolvable:$true] %s28_s16 }
   0x5   :  { %s376_s17 = scalar_lea.vmem %s29_s16, 512  ;;  %p381_p1 = scmp.lt.s32.totalorder %s29_s16, %s29_s16 }
   0x6   :  { %p377_p0 = scmp.ne.s32.totalorder %s29_s16, %s376_s17  ;;  %p382_p2 = scmp.lt.s32.totalorder %s376_s17, %s376_s17 }
   0x8   :  { %p383_p3 = por %p382_p2, %p381_p1 }
   0xa   :  { %p384_p4 = pnand %p383_p3, %p377_p0 }
   0xc   :  { %387 = shalt.err (!%p384_p4)
}
   0xd   :  { %s477_s18 = smov 128   ;;  %s478_s19 = smov 8  }
   0xe   :  { %34 = dma.hbm_to_vmem [thread:$0]  %s549_s1, 512, %s29_s16, [#allocation6], %s477_s18, %s477_s18, %s478_s19  }
   0xf   :  { %s479_s22 = smov [#allocation2]   ;;  %s480_s24 = smov [#allocation7]  }
  0x10   :  { %s19_s23 = sshll.u32 %s479_s22, 4  ;;  %s40_s25 = sshll.u32 %s480_s24, 4  ;;  %s20_s23 = int_to_ptr.vmem [resolvable:$true] %s19_s23  ;;  %s41_s25 = int_to_ptr.vmem [resolvable:$true] %s40_s25 }
  0x11   :  { %s396_s26 = scalar_lea.vmem %s20_s23, 128  ;;  %p401_p6 = scmp.lt.s32.totalorder %s20_s23, %s20_s23 }
  0x12   :  { %p397_p5 = scmp.ne.s32.totalorder %s20_s23, %s396_s26  ;;  %p402_p7 = scmp.lt.s32.totalorder %s396_s26, %s396_s26 }
  0x14   :  { %p403_p8 = por %p402_p7, %p401_p6 }
  0x16   :  { %p404_p9 = pnand %p403_p8, %p397_p5 }
  0x18   :  { %407 = shalt.err (!%p404_p9)
}
  0x19   :  { %22 = dma.hbm_to_vmem [thread:$0]  %s548_s0, 128, %s20_s23, [#allocation3]  }
  0x1a   :  { %s416_s29 = scalar_lea.vmem %s41_s25, 2048  ;;  %p421_p11 = scmp.lt.s32.totalorder %s41_s25, %s41_s25 }
  0x1b   :  { %p417_p10 = scmp.ne.s32.totalorder %s41_s25, %s416_s29  ;;  %p422_p12 = scmp.lt.s32.totalorder %s416_s29, %s416_s29 }
  0x1d   :  { %p423_p13 = por %p422_p12, %p421_p11 }
  0x1f   :  { %p424_p0 = pnand %p423_p13, %p417_p10 }
  0x21   :  { %427 = shalt.err (!%p424_p0)
}
  0x22   :  { %46 = dma.hbm_to_vmem [thread:$0]  %s550_s2, 2048, %s41_s25, [#allocation6], %s477_s18, %s477_s18, %s478_s19  }
  0x23   :  { %s481_s5 = smov [#allocation8]  }
  0x24   :  { %s53_s6 = sshll.u32 %s481_s5, 4  ;;  %s54_s6 = int_to_ptr.vmem [resolvable:$true] %s53_s6 }
  0x25   :  { %s436_s7 = scalar_lea.vmem %s54_s6, 128  ;;  %p441_p2 = scmp.lt.s32.totalorder %s54_s6, %s54_s6 }
  0x26   :  { %p437_p1 = scmp.ne.s32.totalorder %s54_s6, %s436_s7  ;;  %p442_p3 = scmp.lt.s32.totalorder %s436_s7, %s436_s7 }
  0x28   :  { %p443_p4 = por %p442_p3, %p441_p2 }
  0x2a   :  { %p444_p5 = pnand %p443_p4, %p437_p1 }
  0x2c   :  { %447 = shalt.err (!%p444_p5)
}
  0x2d   :  { %56 = dma.hbm_to_vmem [thread:$0]  %s551_s3, 128, %s54_s6, [#allocation9]  }
  0x2e   :  { %468 = dma.done.wait [#allocation3], 128  }
  0x2f   :  { %469 = vsyncadd [#allocation3], 4294967168 }
  0x30   :  { %470 = dma.done.wait [#allocation6], 2560  }
  0x31   :  { %471 = vsyncadd [#allocation6], 4294964736 }
  0x32   :  { %472 = dma.done.wait [#allocation9], 128  }
  0x33   :  { %473 = vsyncadd [#allocation9], 4294967168  ;;  %v482_v0 = vmov 0.0   ;;  %vm483_vm0 = vmmov 0   ;;  %v74_v1 = vld [vmem:[#allocation5 + $0x18] sm:$0xff]  ;;  %v73_v2 = vld [vmem:[#allocation5 + $0x10] sm:$0xff]  ;;  %v75_v22 = vlaneseq }
  0x34   :  { %307 = vmatprep.subr.mxu0 %v482_v0  ;;  %315 = vmatprep.mubr.msk.f32.mxu0 %vm483_vm0, %v482_v0  ;;  %v169_v3 = vld [vmem:[#allocation7 + $0x78] sm:$0xff]  ;;  %v72_v4 = vld [vmem:[#allocation5 + $0x8] sm:$0xff]  ;;  %v168_v5 = vld [vmem:[#allocation7 + $0x70] sm:$0xff]  ;;  %vm79_vm1 = vcmask 261120   ;;  %v484_v40 = vmov 0   ;;  %s485_s2 = smov [#allocation10]  }
  0x35   :  { %318 = vmatprep.subr.mxu1 %v482_v0  ;;  %350 = vmatprep.mubr.msk.f32.mxu1 %vm483_vm0, %v482_v0  ;;  %v167_v6 = vld [vmem:[#allocation7 + $0x68] sm:$0xff]  ;;  %v71_v7 = vld [vmem:[#allocation5] sm:$0xff]  ;;  %v69_v8 = vld [vmem:[#allocation2] sm:$0xff]  ;;  %v76_v23 = vshrl.u32 %v75_v22, 7  ;;  %v258_v45 = vand.u32 127, %v75_v22  ;;  %s273_s3 = sshll.u32 %s485_s2, 4  ;;  %s274_s3 = int_to_ptr.vmem [resolvable:$true] %s273_s3 }
  0x36   :  { %308 = vmatpush3.msra.mxu0 %v74_v1  ;;  %319 = vmatpush3.msra.mxu1 %v169_v3  ;;  %v166_v9 = vld [vmem:[#allocation7 + $0x60] sm:$0xff]  ;;  %v165_v10 = vld [vmem:[#allocation7 + $0x58] sm:$0xff]  ;;  %v164_v11 = vld [vmem:[#allocation7 + $0x50] sm:$0xff]  ;;  %s448_s9 = scalar_lea.vmem %s274_s3, 128  ;;  %p453_p7 = scmp.lt.s32.totalorder %s274_s3, %s274_s3 }
  0x37   :  { %309 = vmatprep.subr.mxu0 %v482_v0  ;;  %320 = vmatprep.subr.mxu1 %v482_v0  ;;  %v163_v12 = vld [vmem:[#allocation7 + $0x48] sm:$0xff]  ;;  %v162_v13 = vld [vmem:[#allocation7 + $0x40] sm:$0xff]  ;;  %v161_v14 = vld [vmem:[#allocation7 + $0x38] sm:$0xff]  ;;  %v77_v24 = vsub.s32 0, %v76_v23  ;;  %v172_v31 = vsub.s32 1, %v76_v23  ;;  %v247_v36 = vsub.s32 2, %v76_v23  ;;  %p449_p6 = scmp.ne.s32.totalorder %s274_s3, %s448_s9  ;;  %p454_p8 = scmp.lt.s32.totalorder %s448_s9, %s448_s9 }
  0x38   :  { %310 = vmatpush3.msra.mxu0 %v73_v2  ;;  %321 = vmatpush3.msra.mxu1 %v168_v5  ;;  %v160_v15 = vld [vmem:[#allocation7 + $0x30] sm:$0xff]  ;;  %v159_v16 = vld [vmem:[#allocation7 + $0x28] sm:$0xff]  ;;  %v158_v17 = vld [vmem:[#allocation7 + $0x20] sm:$0xff]  ;;  %v254_v41 = vsub.s32 3, %v76_v23  ;;  %vm259_vm2 = vcmp.lt.s32.totalorder %v258_v45, 64 }
  0x39   :  { %311 = vmatprep.subr.mxu0 %v482_v0  ;;  %322 = vmatprep.subr.mxu1 %v482_v0  ;;  %v157_v18 = vld [vmem:[#allocation7 + $0x18] sm:$0xff]  ;;  %v156_v19 = vld [vmem:[#allocation7 + $0x10] sm:$0xff]  ;;  %v155_v20 = vld [vmem:[#allocation7 + $0x8] sm:$0xff]  ;;  %p455_p9 = por %p454_p8, %p453_p7 }
  0x3a   :  { %312 = vmatpush3.msra.mxu0 %v72_v4  ;;  %323 = vmatpush3.msra.mxu1 %v167_v6  ;;  %v154_v21 = vld [vmem:[#allocation7] sm:$0xff] }
  0x3b   :  { %313 = vmatprep.subr.mxu0 %v482_v0  ;;  %324 = vmatprep.subr.mxu1 %v482_v0  ;;  %v70_v25 = vld [vmem:[#allocation8] sm:$0xff]  ;;  %p456_p10 = pnand %p455_p9, %p449_p6 }
  0x3c   :  { %314 = vmatpush3.msra.mxu0 %v71_v7  ;;  %325 = vmatpush3.msra.mxu1 %v166_v9  ;;  %v78_v26 = vrot.slane %v70_v25, %v77_v24  ;;  %v173_v32 = vrot.slane %v70_v25, %v172_v31  ;;  %v248_v37 = vrot.slane %v70_v25, %v247_v36 }
  0x3d   :  { %316 = vmatmul.mubr.msk.f32.vlgmr.msra.gmra.mxu0 %vm79_vm1, %v69_v8  ;;  %326 = vmatprep.subr.mxu1 %v482_v0  ;;  %v255_v42 = vrot.slane %v70_v25, %v254_v41 }
  0x3e   :  { %327 = vmatpush3.msra.mxu1 %v165_v10  ;;  %363 = vset.pattern.permute.xlu0 %v484_v40 }
  0x3f   :  { %328 = vmatprep.subr.mxu1 %v482_v0 }
  0x40   :  { %329 = vmatpush3.msra.mxu1 %v164_v11 }
  0x41   :  { %330 = vmatprep.subr.mxu1 %v482_v0 }
  0x42   :  { %331 = vmatpush3.msra.mxu1 %v163_v12 }
  0x43   :  { %332 = vmatprep.subr.mxu1 %v482_v0 }
  0x44   :  { %333 = vmatpush3.msra.mxu1 %v162_v13 }
  0x45   :  { %334 = vmatprep.subr.mxu1 %v482_v0 }
  0x46   :  { %335 = vmatpush3.msra.mxu1 %v161_v14 }
  0x47   :  { %336 = vmatprep.subr.mxu1 %v482_v0 }
  0x48   :  { %337 = vmatpush3.msra.mxu1 %v160_v15 }
  0x49   :  { %338 = vmatprep.subr.mxu1 %v482_v0 }
  0x4a   :  { %339 = vmatpush3.msra.mxu1 %v159_v16 }
  0x4b   :  { %340 = vmatprep.subr.mxu1 %v482_v0 }
  0x4c   :  { %341 = vmatpush3.msra.mxu1 %v158_v17 }
  0x4d   :  { %342 = vmatprep.subr.mxu1 %v482_v0 }
  0x4e   :  { %343 = vmatpush3.msra.mxu1 %v157_v18 }
  0x4f   :  { %344 = vmatprep.subr.mxu1 %v482_v0 }
  0x50   :  { %345 = vmatpush3.msra.mxu1 %v156_v19 }
  0x51   :  { %346 = vmatprep.subr.mxu1 %v482_v0 }
  0x52   :  { %347 = vmatpush3.msra.mxu1 %v155_v20 }
  0x53   :  { %348 = vmatprep.subr.mxu1 %v482_v0 }
  0x54   :  { %349 = vmatpush3.msra.mxu1 %v154_v21 }
  0xfd   :  { %v149_v27 = vpop.f32.mrf.mxu0 }
  0xfe   :  { %v150_v28 = vadd.f32 %v149_v27, %v78_v26 }
  0xff   :  { %v317_v29 = vpop.f32.mrf.mxu0 }
 0x100   :  { %364 = vtanh.f32 %v150_v28 }
 0x10d   :  { %v365_v30 = vpop.eup %364 }
 0x10e   :  { %351 = vmatmul.mubr.f32.vlgmr.msra.gmra.mxu1 %v365_v30 }
 0x1ce   :  { %v240_v33 = vpop.f32.mrf.mxu1 }
 0x1cf   :  { %v241_v34 = vadd.f32 %v240_v33, %v173_v32 }
 0x1d0   :  { %v352_v35 = vpop.f32.mrf.mxu1 }
 0x1d1   :  { %366 = vtanh.f32 %v241_v34 }
 0x1de   :  { %v367_v38 = vpop.eup %366 }
 0x1df   :  { %v249_v39 = vmul.f32 %v367_v38, %v248_v37 }
 0x1e1   :  { %250 = vadd.xlane.f32.xlu0 %v249_v39 }
 0x26a   :  { %v251_v43 = vpop.xlane.xlu0 %250 }
 0x26b   :  { %v256_v44 = vadd.f32 %v255_v42, %v251_v43 }
 0x26d   :  { %262 = vperm.xlu0 %363, %v256_v44  }
 0x2e8   :  { %v263_v46 = vpop.permute.xlu0 %262 }
 0x2e9   :  { %v265_v47 = vsel %vm259_vm2, %v367_v38, %v263_v46 }
 0x2ea   :  { %266 = vst [vmem:[#allocation10] sm:$0xff] %v265_v47 }
 0x2eb   :  { %459 = shalt.err (!%p456_p10)
}
 0x2ec   :  { %276 = dma.vmem_to_hbm [thread:$0]  %s274_s3, 128, %s552_s4, [#allocation4]  }
 0x2ed   :  { %474 = dma.done.wait [#allocation4], 128  }
 0x2ee   :  { %475 = vsyncadd [#allocation4], 4294967168 }
 0x2ef   :  { %280 = vsyncpa [#allocation3], 1 }
 0x2f0   :  { %281 = vsyncpa [#allocation6], 1 }
 0x2f1   :  { %282 = vsyncpa [#allocation9], 1 }
 0x2f2   :  { %283 = vsyncpa [#allocation4], 1 }

</bundles_post_ra>
